<compile_context>
chip_gen: v7x
topology: tpu7x:2x2x1
jax: 0.10.0
libtpu: 0.0.40
codegen_flags: <defaults>
</compile_context>

<pallas_src>
import functools

import jax
import jax.numpy as jnp
from jax.experimental import pallas as pl
from jax.experimental.pallas import tpu as pltpu


# --------------------------- in-kernel helpers ------------------------------

def _chunk_partial_sums(x_ref, C, T, Tt, Fc, t, masked):
    """Sum and sum-of-squares over the frame axis of the current (C, Tt) tile.

    The tile is streamed in Fc-wide lane chunks so the x*x temporary never
    exceeds (C, Fc).  Returns a (2, C) f32 array: row 0 = sum, row 1 = sumsq.
    `masked` (static) zeroes out-of-range frame columns of the ragged last tile.
    """
    dn = (((1,), (1,)), ((), ()))

    def chunk(start, size):
        xc = x_ref[0, :, pl.ds(start, size)]                      # (C, size), input dtype
        if masked:
            # Zero the out-of-range columns: block data past the array end is
            # undefined and must not reach the MXU (0*NaN would poison it).
            col = jax.lax.broadcasted_iota(jnp.int32, (C, size), 1) + start
            xc = jnp.where(col < (T - t * Tt), xc, jnp.zeros_like(xc))
        ones = jnp.ones((1, size), xc.dtype)
        s = jax.lax.dot_general(ones, xc, dn,
                                preferred_element_type=jnp.float32)       # (1, C)
        q = jax.lax.dot_general(ones, xc * xc, dn,
                                preferred_element_type=jnp.float32)       # (1, C)
        return s, q

    n_full, rem = Tt // Fc, Tt % Fc
    s_tot = jnp.zeros((1, C), jnp.float32)
    q_tot = jnp.zeros((1, C), jnp.float32)

    if n_full > 0:
        def body(j, carry):
            s_a, q_a = carry
            s, q = chunk(pl.multiple_of(j * Fc, Fc), Fc)
            return s_a + s, q_a + q
        s_tot, q_tot = jax.lax.fori_loop(0, n_full, body, (s_tot, q_tot),
                                         unroll=n_full <= 8)
    if rem > 0:
        s, q = chunk(n_full * Fc, rem)
        s_tot, q_tot = s_tot + s, q_tot + q

    return jnp.concatenate([s_tot, q_tot], axis=0)                # (2, C)


def _finalize(acc, T, o_ref):
    """acc = (2, C) [sum; sumsq] -> o_ref[0] = (2, C) [mean; unbiased var]."""
    s_tot = acc[0:1, :]
    q_tot = acc[1:2, :]
    mean = s_tot * (1.0 / T)
    var = (q_tot - s_tot * mean) * (1.0 / (T - 1))
    var = jnp.maximum(var, 0.0)        # cancellation guard
    o_ref[0] = jnp.concatenate([mean, var], axis=0)


# ------------------------------- kernels ------------------------------------

def _tsp_full_kernel(Ct, T, Fc, x_ref, o_ref):
    """Whole-frame-axis tile: x_ref (1, Ct, T) -> o_ref (1, 2, Ct). No scratch."""
    acc = _chunk_partial_sums(x_ref, Ct, T, T, Fc, 0, masked=False)
    _finalize(acc, T, o_ref)


def _tsp_acc_kernel(C, T, Tt, Fc, x_ref, o_ref, acc_ref):
    """Frame-tiled path: x_ref (1, C, Tt); acc_ref (2, C) f32 running [sum; sumsq];
    o_ref (1, 2, C) written once at the last frame tile."""
    t = pl.program_id(1)
    nt = pl.num_programs(1)

    def accumulate(part):
        # Select-based init: at t == 0 the (uninitialized) accumulator read is
        # discarded by the select, so no separate init branch is needed.
        acc_ref[...] = jnp.where(t == 0, part, acc_ref[...] + part)

    if T % Tt == 0:
        accumulate(_chunk_partial_sums(x_ref, C, T, Tt, Fc, t, masked=False))
    else:
        # Ragged last tile: only that tile pays the iota/compare/select passes.
        @pl.when(t < nt - 1)
        def _():
            accumulate(_chunk_partial_sums(x_ref, C, T, Tt, Fc, t, masked=False))

        @pl.when(t == nt - 1)
        def _():
            accumulate(_chunk_partial_sums(x_ref, C, T, Tt, Fc, t, masked=True))

    @pl.when(t == nt - 1)
    def _():
        _finalize(acc_ref[...], T, o_ref)


# ------------------------------- wrapper -------------------------------------

def temporal_statistics_pooling(x, *, frame_block=None):
    """Temporal Statistics Pooling.

    x: (batch, channels, frames). Returns (batch, 2*channels) with the frame
    mean in the first `channels` columns and the unbiased frame variance in
    the last `channels` columns (matches torch.cat((mean, var), dim=1)).

    `frame_block` is a testing/override knob; the default path picks the
    largest (usually whole-T) frame tile that fits the VMEM budget.
    """
    x = jnp.asarray(x)
    B, C, T = x.shape
    if T < 2:
        raise ValueError("TemporalStatisticsPooling needs >= 2 frames "
                         "(unbiased variance).")

    itemsize = x.dtype.itemsize
    # In-kernel chunk width for the squared term (keeps the x*x temp small and
    # the strided-row reads >= ~2 KiB).
    Fc = 1024 if itemsize <= 2 else 512

    # Frame-tile selection: prefer Tt == T (contiguous DMA, no ragged path).
    budget = 12 * 1024 * 1024        # double-buffered input stream; v5e-safe
    if frame_block is not None:
        Tt = T if frame_block >= T else max(128, (frame_block // 128) * 128)
    elif 2 * C * T * itemsize <= budget:
        Tt = T
    else:
        min_tt = 2048 if itemsize <= 2 else 1024
        tt = (budget // (2 * C * itemsize)) // 128 * 128
        tt = max(int(tt), min_tt)
        Tt = T if tt >= T else tt

    # Raise the scoped-VMEM limit only if the minimum-tile floor pushed the
    # double-buffered stream past the conservative budget (very wide C).
    in_stream_bytes = 2 * C * Tt * itemsize
    vmem_limit = None
    if in_stream_bytes > budget:
        vmem_limit = int(in_stream_bytes) + (8 << 20)

    # Advisory cost hint (square + two ones-matmul reductions per element).
    ce = pl.CostEstimate(flops=int(6 * B * C * T), transcendentals=0,
                         bytes_accessed=int(x.size * itemsize + B * 2 * C * 4))

    if Tt == T:
        # Whole-frame path: no accumulator, both grid axes parallel.  For tiny
        # batch, split channels so both v7x TensorCores get a full reduction.
        n_ct = 2 if (B == 1 and C % 256 == 0) else 1
        Ct = C // n_ct
        kernel = functools.partial(_tsp_full_kernel, Ct, T, Fc)
        out = pl.pallas_call(
            kernel,
            out_shape=jax.ShapeDtypeStruct((B, 2, C), jnp.float32),
            grid=(B, n_ct),
            in_specs=[pl.BlockSpec((1, Ct, T), lambda b, c: (b, c, 0))],
            out_specs=pl.BlockSpec((1, 2, Ct), lambda b, c: (b, 0, c)),
            compiler_params=pltpu.CompilerParams(
                dimension_semantics=("parallel", "parallel"),
                vmem_limit_bytes=vmem_limit),
            cost_estimate=ce,
        )(x)
    else:
        nt = pl.cdiv(T, Tt)
        kernel = functools.partial(_tsp_acc_kernel, C, T, Tt, Fc)
        out = pl.pallas_call(
            kernel,
            out_shape=jax.ShapeDtypeStruct((B, 2, C), jnp.float32),
            grid=(B, nt),
            in_specs=[pl.BlockSpec((1, C, Tt), lambda b, t: (b, 0, t))],
            out_specs=pl.BlockSpec((1, 2, C), lambda b, t: (b, 0, 0)),
            scratch_shapes=[pltpu.VMEM((2, C), jnp.float32)],
            compiler_params=pltpu.CompilerParams(
                dimension_semantics=("parallel", "arbitrary"),
                vmem_limit_bytes=vmem_limit),
            cost_estimate=ce,
        )(x)

    return out.reshape(B, 2 * C).astype(x.dtype)


# ------------------------ pure-JAX reference (for checking) -----------------

def reference_tsp(x):
    mean = jnp.mean(x, axis=2)
    var = jnp.var(x, axis=2, ddof=1)               # unbiased, as in torch.var
    return jnp.concatenate([mean, var], axis=1)


if __name__ == "__main__":
    key = jax.random.PRNGKey(0)
    k1, k2, k3, k4 = jax.random.split(key, 4)

    # 1) Default path: whole-frame tile (Tt == T), grid (B, 1), no accumulator.
    x1 = jax.random.normal(k1, (2, 128, 200), jnp.float32)
    y1 = jax.block_until_ready(temporal_statistics_pooling(x1))
    r1 = reference_tsp(x1)
    assert y1.shape == (2, 256), y1.shape
    e1 = float(jnp.max(jnp.abs(y1 - r1)))
    assert e1 < 1e-3, f"max abs error {e1}"

    # 2) Channel-tiled whole-frame path (B=1, C%256==0): grid (1, 2), both parallel.
    x2 = jax.random.normal(k2, (1, 256, 150), jnp.float32)
    y2 = jax.block_until_ready(temporal_statistics_pooling(x2))
    r2 = reference_tsp(x2)
    assert y2.shape == (1, 512), y2.shape
    e2 = float(jnp.max(jnp.abs(y2 - r2)))
    assert e2 < 1e-3, f"max abs error {e2}"

    # 3) Frame-tiled path with ragged last tile + accumulator (forced via override).
    x3 = jax.random.normal(k3, (2, 80, 300), jnp.float32)
    y3 = jax.block_until_ready(temporal_statistics_pooling(x3, frame_block=128))
    r3 = reference_tsp(x3)
    assert y3.shape == (2, 160), y3.shape
    e3 = float(jnp.max(jnp.abs(y3 - r3)))
    assert e3 < 1e-3, f"max abs error {e3}"

    # 4) bf16 input: streamed without an up-front f32 cast (native bf16 MXU feed).
    x4 = jax.random.normal(k4, (2, 96, 200), jnp.float32).astype(jnp.bfloat16)
    y4 = jax.block_until_ready(temporal_statistics_pooling(x4))
    r4 = reference_tsp(x4.astype(jnp.float32))
    assert y4.shape == (2, 192), y4.shape
    e4 = float(jnp.max(jnp.abs(y4.astype(jnp.float32) - r4)))
    assert e4 < 3e-2, f"max abs error {e4}"

    print("KERNEL_OK")
</pallas_src>

<mosaic_0001>
module attributes {stable_mosaic.version = 11 : i64} {
  func.func @_tsp_full_kernel(%arg0: i32, %arg1: i32, %arg2: memref<1x128x200xf32, #tpu.memory_space<vmem>>, %arg3: memref<1x2x128xf32, #tpu.memory_space<vmem>>) attributes {dimension_semantics = [#tpu.dimension_semantics<parallel>, #tpu.dimension_semantics<parallel>], iteration_bounds = array<i64: 2, 1>, scalar_prefetch = 0 : i64, scratch_operands = 0 : i64, tpu.core_type = #tpu.core_type<tc>, window_params = [{transform_indices = @transform_0, window_bounds = array<i64: 1, 128, 200>}, {transform_indices = @transform_1, window_bounds = array<i64: 1, 2, 128>}]} {
    %cst = arith.constant 0.000000e+00 : f32
    %0 = vector.broadcast %cst : f32 to vector<1x128xf32>
    %cst_0 = arith.constant 0.000000e+00 : f32
    %1 = vector.broadcast %cst_0 : f32 to vector<1x128xf32>
    %c0 = arith.constant 0 : index
    %c0_1 = arith.constant 0 : index
    %c0_2 = arith.constant 0 : index
    %2 = vector.load %arg2[%c0, %c0_1, %c0_2] : memref<1x128x200xf32, #tpu.memory_space<vmem>>, vector<1x128x200xf32>
    %3 = vector.shape_cast %2 : vector<1x128x200xf32> to vector<128x200xf32>
    %cst_3 = arith.constant 1.000000e+00 : f32
    %4 = vector.broadcast %cst_3 : f32 to vector<1x200xf32>
    %cst_4 = arith.constant dense<0.000000e+00> : vector<1x128xf32>
    %5 = tpu.matmul %4, %3, %cst_4 {dimension_numbers = #tpu.dot_dimension_numbers<[1], [1], [0], [0], [0, 0, 1, 0], [], []>} : vector<1x200xf32>, vector<128x200xf32>, vector<1x128xf32> -> vector<1x128xf32>
    %6 = arith.mulf %3, %3 : vector<128x200xf32>
    %cst_5 = arith.constant dense<0.000000e+00> : vector<1x128xf32>
    %7 = tpu.matmul %4, %6, %cst_5 {dimension_numbers = #tpu.dot_dimension_numbers<[1], [1], [0], [0], [0, 0, 1, 0], [], []>} : vector<1x200xf32>, vector<128x200xf32>, vector<1x128xf32> -> vector<1x128xf32>
    %8 = arith.addf %0, %5 : vector<1x128xf32>
    %9 = arith.addf %1, %7 : vector<1x128xf32>
    %10 = tpu.concatenate %8, %9 in 0 : vector<1x128xf32>, vector<1x128xf32> -> vector<2x128xf32>
    %11 = vector.extract_strided_slice %10 {offsets = [0, 0], sizes = [1, 128], strides = [1, 1]} : vector<2x128xf32> to vector<1x128xf32>
    %12 = vector.extract_strided_slice %10 {offsets = [1, 0], sizes = [1, 128], strides = [1, 1]} : vector<2x128xf32> to vector<1x128xf32>
    %cst_6 = arith.constant 5.000000e-03 : f32
    %13 = vector.broadcast %cst_6 : f32 to vector<1x128xf32>
    %14 = arith.mulf %11, %13 : vector<1x128xf32>
    %15 = arith.mulf %11, %14 : vector<1x128xf32>
    %16 = arith.subf %12, %15 : vector<1x128xf32>
    %cst_7 = arith.constant 0.00502512557 : f32
    %17 = vector.broadcast %cst_7 : f32 to vector<1x128xf32>
    %18 = arith.mulf %16, %17 : vector<1x128xf32>
    %cst_8 = arith.constant 0.000000e+00 : f32
    %19 = vector.broadcast %cst_8 : f32 to vector<1x128xf32>
    %20 = arith.maximumf %18, %19 : vector<1x128xf32>
    %21 = tpu.concatenate %14, %20 in 0 : vector<1x128xf32>, vector<1x128xf32> -> vector<2x128xf32>
    %c0_9 = arith.constant 0 : index
    %c0_10 = arith.constant 0 : index
    %c0_11 = arith.constant 0 : index
    %22 = vector.load %arg3[%c0_9, %c0_10, %c0_11] : memref<1x2x128xf32, #tpu.memory_space<vmem>>, vector<1x2x128xf32>
    %23 = vector.shape_cast %22 : vector<1x2x128xf32> to vector<2x128xf32>
    %24 = vector.shape_cast %21 : vector<2x128xf32> to vector<1x2x128xf32>
    tpu.vector_store %arg3[%c0_9, %c0_10, %c0_11], %24 {strides = array<i32>} : memref<1x2x128xf32, #tpu.memory_space<vmem>>, vector<1x2x128xf32>,
    return
  }
  func.func @transform_0(%arg0: i32, %arg1: i32) -> (i32, i32, i32) {
    %c0_i32 = arith.constant 0 : i32
    %c0_i32_0 = arith.constant 0 : i32
    return %arg0, %arg1, %c0_i32 : i32, i32, i32
  }
  func.func @transform_1(%arg0: i32, %arg1: i32) -> (i32, i32, i32) {
    %c0_i32 = arith.constant 0 : i32
    %c0_i32_0 = arith.constant 0 : i32
    return %arg0, %c0_i32, %arg1 : i32, i32, i32
  }
}

</mosaic_0001>

<bundles_post_ra>
// kernel: tpu_custom_call.1
= control target key start
LH: loop header
LB: loop body
LE: loop exit
PB: predicated region body
PF: predicated region fallthrough
CT: control target
= control target key end

     0   :  { %6 = vsyncpa [#allocation3], 0  ;;  %s1022_s0 = inlined_call_operand.vmem [shape: f32[2,128,200], index: 0, kind: input, shape index: {}]   ;;  %s1023_s1 = inlined_call_operand.hbm [shape: f32[2,2,128], index: 1, kind: output, shape index: {}]  }
   0x1   :  { %8 = vsyncpa [#allocation3 + $0x1], 0  ;;  %s834_s6 = smov 0   ;;  %s836_s7 = smov 0  }
   0x2   :  { %s838_s8 = smov 0   ;;  %s840_s9 = smov 0  }
   0x3   :  { %s842_s10 = smov 0   ;;  %s844_s11 = smov 0  }
   0x4 LB: > { %s559_s12 = sadd.s32 4294967295, %s820_s11   ;;  %s560_s13 = sadd.s32 4294967294, %s820_s11   ;;  %s820_s11 = sphi %s844_s11, %s14_s11   ;;  %s816_s10 = sphi %s842_s10, %s1032_s10   ;;  %s812_s9 = sphi %s840_s9, %s1031_s9   ;;  %s808_s8 = sphi %s838_s8, %s1030_s8   ;;  %s804_s7 = sphi %s836_s7, %s1029_s7   ;;  %s800_s6 = sphi %s834_s6, %s1028_s6  }
   0x5   : > { %s26_s14 = sadd.s32 1, %s816_s10  ;;  %s63_s15 = sadd.s32 1, %s808_s8 }
   0x6   : > { %p28_p0 = scmp.ge.s32.totalorder %s26_s14, 2  ;;  %p73_p1 = scmp.ne.s32.totalorder %s808_s8, %s804_s7 }
   0x7   : > { %p74_p2 = scmp.eq.s32.totalorder %s559_s12, 1  ;;  %p79_p3 = scmp.ne.s32.totalorder %s804_s7, %s800_s6 }
   0x8   : > { %s1034_s14 = smov (%p28_p0, %s26_s14), 0  ;;  %p80_p5 = scmp.eq.s32.totalorder %s560_s13, 1 }
   0x9   : > { %p874_p4 = por %p74_p2, %p73_p1  ;;  %s58_s17 = ssub.s32 %s816_s10, %s1034_s14 }
   0xa   : > { %p563_p6 = scmp.ge.s32.totalorder %s820_s11, 1  ;;  %p61_p7 = scmp.eq.s32.totalorder %s58_s17, 0 }
   0xb   : > { %p881_p8 = por %p80_p5, %p79_p3  ;;  %p112_p9 = scmp.lt.s32.totalorder %s820_s11, 3 }
   0xc   : > { %s887_s19 = scalar_select %p61_p7, %s808_s8, %s63_s15  }
   0xd   : > { %p113_p10 = pnand %p563_p6, %p112_p9 }
   0xe   : > { %p138_p11 = scmp.lt.s32.totalorder (!%p113_p10), %s812_s9, 1  ;;  %vm212_vm0 = vcmask (!%p113_p10), 588800   ;;  %v822_v0 = vmov (!%p113_p10), 1.0   ;;  %vm455_vm2 = vcmask (!%p113_p10), 1040384   ;;  %s134_s25 = sand.u32 (!%p113_p10), 1, %s804_s7  }
   0xf   : > { %116 = sbr.rel (%p113_p10) target bundleno = 337 (0x151), region = 24  ;;  %600 = vmatprep.mubr.msk.f32.mxu1 (!%p113_p10), %vm212_vm0, %v822_v0  ;;  %583 = vmatprep.mubr.msk.f32.mxu0 (!%p113_p10), %vm212_vm0, %v822_v0  ;;  %vm898_vm1 = vmpackc.low (!%p113_p10), %vm212_vm0, %vm212_vm0  ;;  %s564_s26 = sshll.u32 (!%p113_p10), %s134_s25, 1 }
  0x10   : > { %s602_s27 = sshll.u32 (!%p113_p10), %s812_s9, 5  ;;  %s136_s28 = scalar_lea.vmem (!%p113_p10), [#allocation2], %s564_s26 }
  0x11   : > { %s482_s29 = sshll.u32 (!%p113_p10), %s136_s28, 4  ;;  %s974_s3 = scalar_lea.hbm (!%p113_p10), %s1023_s1, %s602_s27  ;;  %s976_s29 = int_to_ptr.vmem [resolvable:$true] %s482_s29 }
  0x12   : > { %s468_s4 = scalar_lea.sflag (!%p113_p10), [#allocation3], %s134_s25  ;;  %s742_s5 = scalar_lea.vmem (!%p113_p10), %s976_s29, 32 }
  0x13   : > { %p743_p12 = scmp.ne.s32.totalorder (!%p113_p10), %s976_s29, %s742_s5 }
  0x15   : > { %p744_p13 = pnand (!%p113_p10), %p743_p12, %p874_p4 }
  0x16   : > { %s139_s20 = scalar_select %p138_p11, %s812_s9, 1 }
  0x17   : > { %p745_p0 = pneg %p744_p13  ;;  %s823_s9 = smov [#allocation2]  }
  0x18   : > { %s605_s21 = sshll.u32 %s139_s20, 8  ;;  %s746_s12 = sshll.u32 %s823_s9, 4  ;;  %s747_s12 = int_to_ptr.vmem [resolvable:$false] %s746_s12 }
  0x19   : > { %s896_s24 = scalar_lea.vmem %s1022_s0, %s605_s21  ;;  %s748_s13 = scalar_lea.vmem %s747_s12, 64 }
  0x1a   : > { %v149_v2 = vld [vmem:[%s896_s24 + $0x8] sm:$0xff]  ;;  %v151_v3 = vld [vmem:[%s896_s24 + $0x18] sm:$0xff]  ;;  %v148_v4 = vld [vmem:[%s896_s24] sm:$0xff]  ;;  %p749_p1 = scmp.lt.s32.totalorder %s976_s29, %s747_s12  ;;  %p750_p2 = scmp.lt.s32.totalorder %s748_s13, %s742_s5 }
  0x1b   : > { %v181_v5 = vmul.f32 %v149_v2, %v149_v2  ;;  %v183_v6 = vmul.f32 %v151_v3, %v151_v3  ;;  %v606_v7 = vpack.c.bf16 %v151_v3, %v149_v2  ;;  %v150_v8 = vld [vmem:[%s896_s24 + $0x10] sm:$0xff]  ;;  %v180_v9 = vmul.f32 %v148_v4, %v148_v4  ;;  %v153_v10 = vld [vmem:[%s896_s24 + $0x28] sm:$0xff]  ;;  %v155_v11 = vld [vmem:[%s896_s24 + $0x38] sm:$0xff] }
  0x1c   : > { %v182_v12 = vmul.f32 %v150_v8, %v150_v8  ;;  %v609_v13 = vpack.c.bf16 %v150_v8, %v148_v4  ;;  %v185_v14 = vmul.f32 %v153_v10, %v153_v10  ;;  %v187_v15 = vmul.f32 %v155_v11, %v155_v11  ;;  %v152_v18 = vld [vmem:[%s896_s24 + $0x20] sm:$0xff]  ;;  %v154_v19 = vld [vmem:[%s896_s24 + $0x30] sm:$0xff]  ;;  %v157_v22 = vld [vmem:[%s896_s24 + $0x48] sm:$0xff]  ;;  %p751_p3 = por %p750_p2, %p749_p1 }
  0x1d   : > { %v646_v16 = vpack.c.bf16 %v183_v6, %v181_v5  ;;  %608 = vmatprep.subr.msk.bf16.mxu0 %vm898_vm1, %v606_v7  ;;  %v611_v17 = vpack.c.bf16 %v155_v11, %v153_v10  ;;  %v159_v23 = vld [vmem:[%s896_s24 + $0x58] sm:$0xff]  ;;  %v184_v24 = vmul.f32 %v152_v18, %v152_v18  ;;  %v186_v25 = vmul.f32 %v154_v19, %v154_v19  ;;  %v156_v32 = vld [vmem:[%s896_s24 + $0x40] sm:$0xff]  ;;  %v158_v33 = vld [vmem:[%s896_s24 + $0x50] sm:$0xff] }
  0x1e   : > { %v649_v20 = vpack.c.bf16 %v182_v12, %v180_v9  ;;  %610 = vmatpush1.bf16.xpose.msra.mxu0 %v609_v13  ;;  %v651_v21 = vpack.c.bf16 %v187_v15, %v185_v14  ;;  %v189_v26 = vmul.f32 %v157_v22, %v157_v22  ;;  %v191_v27 = vmul.f32 %v159_v23, %v159_v23  ;;  %v161_v34 = vld [vmem:[%s896_s24 + $0x68] sm:$0xff]  ;;  %v163_v35 = vld [vmem:[%s896_s24 + $0x78] sm:$0xff]  ;;  %v160_v44 = vld [vmem:[%s896_s24 + $0x60] sm:$0xff]  ;;  %p752_p5 = pnand %p751_p3, %p745_p0 }
  0x1f   : > { %648 = vmatprep.subr.msk.bf16.mxu1 %vm898_vm1, %v646_v16  ;;  %613 = vmatprep.subr.msk.bf16.mxu0 %vm898_vm1, %v611_v17  ;;  %v614_v28 = vpack.c.bf16 %v154_v19, %v152_v18  ;;  %v616_v29 = vpack.c.bf16 %v159_v23, %v157_v22  ;;  %v654_v30 = vpack.c.bf16 %v186_v25, %v184_v24  ;;  %v162_v45 = vld [vmem:[%s896_s24 + $0x70] sm:$0xff]  ;;  %v165_v46 = vld [vmem:[%s896_s24 + $0x88] sm:$0xff]  ;;  %v167_v47 = vld [vmem:[%s896_s24 + $0x98] sm:$0xff] }
  0x20   : > { %650 = vmatpush1.bf16.xpose.msra.mxu1 %v649_v20  ;;  %v656_v31 = vpack.c.bf16 %v191_v27, %v189_v26  ;;  %v188_v36 = vmul.f32 %v156_v32, %v156_v32  ;;  %v190_v37 = vmul.f32 %v158_v33, %v158_v33  ;;  %v193_v38 = vmul.f32 %v161_v34, %v161_v34  ;;  %v164_v56 = vld [vmem:[%s896_s24 + $0x80] sm:$0xff]  ;;  %v166_v57 = vld [vmem:[%s896_s24 + $0x90] sm:$0xff]  ;;  %v169_v58 = vld [vmem:[%s896_s24 + $0xa8] sm:$0xff] }
  0x21   : > { %653 = vmatprep.subr.msk.bf16.mxu1 %vm898_vm1, %v651_v21  ;;  %v195_v39 = vmul.f32 %v163_v35, %v163_v35  ;;  %v619_v40 = vpack.c.bf16 %v158_v33, %v156_v32  ;;  %v621_v41 = vpack.c.bf16 %v163_v35, %v161_v34  ;;  %v192_v48 = vmul.f32 %v160_v44, %v160_v44  ;;  %v171_v59 = vld [vmem:[%s896_s24 + $0xb8] sm:$0xff]  ;;  %v168_v6 = vld [vmem:[%s896_s24 + $0xa0] sm:$0xff]  ;;  %v170_v7 = vld [vmem:[%s896_s24 + $0xb0] sm:$0xff] }
  0x22   : > { %v659_v42 = vpack.c.bf16 %v190_v37, %v188_v36  ;;  %v194_v49 = vmul.f32 %v162_v45, %v162_v45  ;;  %v197_v50 = vmul.f32 %v165_v46, %v165_v46  ;;  %v199_v51 = vmul.f32 %v167_v47, %v167_v47  ;;  %v173_v8 = vld [vmem:[%s896_s24 + $0xc8] sm:$0xff]  ;;  %v175_v9 = vld [vmem:[%s896_s24 + $0xd8] sm:$0xff]  ;;  %v172_v18 = vld [vmem:[%s896_s24 + $0xc0] sm:$0xff] }
  0x23   : > { %v661_v43 = vpack.c.bf16 %v195_v39, %v193_v38  ;;  %v624_v52 = vpack.c.bf16 %v162_v45, %v160_v44  ;;  %v626_v53 = vpack.c.bf16 %v167_v47, %v165_v46  ;;  %v196_v60 = vmul.f32 %v164_v56, %v164_v56  ;;  %v174_v19 = vld [vmem:[%s896_s24 + $0xd0] sm:$0xff]  ;;  %v177_v20 = vld [vmem:[%s896_s24 + $0xe8] sm:$0xff]  ;;  %v179_v21 = vld [vmem:[%s896_s24 + $0xf8] sm:$0xff] }
  0x24   : > { %v664_v54 = vpack.c.bf16 %v194_v49, %v192_v48  ;;  %v666_v55 = vpack.c.bf16 %v199_v51, %v197_v50  ;;  %v198_v61 = vmul.f32 %v166_v57, %v166_v57  ;;  %v201_v62 = vmul.f32 %v169_v58, %v169_v58 }
  0x25   : > { %v203_v63 = vmul.f32 %v171_v59, %v171_v59  ;;  %v629_v2 = vpack.c.bf16 %v166_v57, %v164_v56  ;;  %v631_v3 = vpack.c.bf16 %v171_v59, %v169_v58  ;;  %v200_v10 = vmul.f32 %v168_v6, %v168_v6 }
  0x26   : > { %615 = vmatpush1.bf16.xpose.msra.mxu0 %v614_v28  ;;  %v669_v4 = vpack.c.bf16 %v198_v61, %v196_v60  ;;  %v202_v11 = vmul.f32 %v170_v7, %v170_v7  ;;  %v205_v12 = vmul.f32 %v173_v8, %v173_v8  ;;  %v207_v13 = vmul.f32 %v175_v9, %v175_v9 }
  0x27   : > { %618 = vmatprep.subr.msk.bf16.mxu0 %vm898_vm1, %v616_v29  ;;  %v671_v5 = vpack.c.bf16 %v203_v63, %v201_v62  ;;  %v634_v14 = vpack.c.bf16 %v170_v7, %v168_v6  ;;  %v636_v15 = vpack.c.bf16 %v175_v9, %v173_v8  ;;  %v204_v22 = vmul.f32 %v172_v18, %v172_v18 }
  0x28   : > { %655 = vmatpush1.bf16.xpose.msra.mxu1 %v654_v30  ;;  %v674_v16 = vpack.c.bf16 %v202_v11, %v200_v10  ;;  %v676_v17 = vpack.c.bf16 %v207_v13, %v205_v12  ;;  %v206_v23 = vmul.f32 %v174_v19, %v174_v19  ;;  %v209_v24 = vmul.f32 %v177_v20, %v177_v20  ;;  %v176_v30 = vld [vmem:[%s896_s24 + $0xe0] sm:$0xff] }
  0x29   : > { %658 = vmatprep.subr.msk.bf16.mxu1 %vm898_vm1, %v656_v31  ;;  %v211_v25 = vmul.f32 %v179_v21, %v179_v21  ;;  %v639_v26 = vpack.c.bf16 %v174_v19, %v172_v18  ;;  %v641_v27 = vpack.c.bf16 %v179_v21, %v177_v20  ;;  %v178_v31 = vld [vmem:[%s896_s24 + $0xf0] sm:$0xff]  ;;  %v208_v32 = vmul.f32 %v176_v30, %v176_v30 }
  0x2a   : > { %v679_v28 = vpack.c.bf16 %v206_v23, %v204_v22  ;;  %v210_v33 = vmul.f32 %v178_v31, %v178_v31  ;;  %v644_v34 = vpack.c.bf16 %v178_v31, %v176_v30 }
  0x2b   : > { %v681_v29 = vpack.c.bf16 %v211_v25, %v209_v24 }
  0x2c   : > { %v684_v35 = vpack.c.bf16 %v210_v33, %v208_v32 }
  0x2e   : > { %620 = vmatpush1.bf16.xpose.msra.mxu0 %v619_v40 }
  0x2f   : > { %623 = vmatprep.subr.msk.bf16.mxu0 %vm898_vm1, %v621_v41 }
  0x30   : > { %660 = vmatpush1.bf16.xpose.msra.mxu1 %v659_v42 }
  0x31   : > { %663 = vmatprep.subr.msk.bf16.mxu1 %vm898_vm1, %v661_v43 }
  0x36   : > { %625 = vmatpush1.bf16.xpose.msra.mxu0 %v624_v52 }
  0x37   : > { %628 = vmatprep.subr.msk.bf16.mxu0 %vm898_vm1, %v626_v53 }
  0x38   : > { %665 = vmatpush1.bf16.xpose.msra.mxu1 %v664_v54 }
  0x39   : > { %668 = vmatprep.subr.msk.bf16.mxu1 %vm898_vm1, %v666_v55 }
  0x3e   : > { %630 = vmatpush1.bf16.xpose.msra.mxu0 %v629_v2 }
  0x3f   : > { %633 = vmatprep.subr.msk.bf16.mxu0 %vm898_vm1, %v631_v3 }
  0x40   : > { %670 = vmatpush1.bf16.xpose.msra.mxu1 %v669_v4 }
  0x41   : > { %673 = vmatprep.subr.msk.bf16.mxu1 %vm898_vm1, %v671_v5 }
  0x46   : > { %635 = vmatpush1.bf16.xpose.msra.mxu0 %v634_v14 }
  0x47   : > { %638 = vmatprep.subr.msk.bf16.mxu0 %vm898_vm1, %v636_v15 }
  0x48   : > { %675 = vmatpush1.bf16.xpose.msra.mxu1 %v674_v16 }
  0x49   : > { %678 = vmatprep.subr.msk.bf16.mxu1 %vm898_vm1, %v676_v17 }
  0x4e   : > { %640 = vmatpush1.bf16.xpose.msra.mxu0 %v639_v26 }
  0x4f   : > { %643 = vmatprep.subr.msk.bf16.mxu0 %vm898_vm1, %v641_v27 }
  0x50   : > { %680 = vmatpush1.bf16.xpose.msra.mxu1 %v679_v28 }
  0x51   : > { %683 = vmatprep.subr.msk.bf16.mxu1 %vm898_vm1, %v681_v29 }
  0x56   : > { %645 = vmatpush1.bf16.xpose.msra.mxu0 %v644_v34 }
  0x58   : > { %685 = vmatpush1.bf16.xpose.msra.mxu1 %v684_v35 }
  0x5d   : > { %329 = vmatmul.mubr.f32.vlgmr.msra.gmra.mrb[0].mxu0 %v822_v0 }
  0x5f   : > { %447 = vmatmul.mubr.f32.vlgmr.msra.gmra.mrb[0].mxu1 %v822_v0 }
 0x130   : > { %v330_v36 = vpop.f32.mrb[0].mxu0 }
 0x131   : > { %v332_v37 = vpop.f32.mrb[1].mxu0 }
 0x132   : > { %v448_v38 = vpop.f32.mrb[0].mxu1 }
 0x133   : > { %v453_v39 = vrot.slane %v448_v38, 7  ;;  %v450_v40 = vpop.f32.mrb[1].mxu1 }
 0x135   : > { %v456_v41 = vsel %vm455_vm2, %v330_v36, %v453_v39 }
 0x136   : > { %v457_v1 = vmul.f32 0.005, %v456_v41 }
 0x138   : > { %v458_v42 = vmul.f32 %v457_v1, %v456_v41 }
 0x13a   : > { %v460_v43 = vrot.slane %v458_v42, 7 }
 0x13c   : > { %v462_v44 = vsub.f32 %v456_v41, %v460_v43 }
 0x13e   : > { %v463_v45 = vmul.f32 0.0050251256, %v462_v44 }
 0x140   : > { %v464_v0 = vmax.f32 %v463_v45, 0.0 }
 0x142   : > { %v465_v46 = vsel %vm455_vm2, %v457_v1, %v464_v0 }
 0x143   : > { %466 = vst [vmem:[%s136_s28] sm:$0x3] %v465_v46 }
 0x144   : > { %755 = shalt.err (!%p752_p5)
}
 0x145   : > { %s756_s15 = scalar_lea.hbm %s974_s3, 32  ;;  %s760_s21 = scalar_lea.hbm %s1023_s1, 64 }
 0x146   : > { %p757_p6 = scmp.ne.s32.totalorder %s974_s3, %s756_s15  ;;  %p761_p10 = scmp.lt.u32.totalorder %s974_s3, %s1023_s1 }
 0x147   : > { %p762_p11 = scmp.lt.u32.totalorder %s760_s21, %s756_s15  ;;  %p764_p13 = scmp.lt.u32.totalorder %s756_s15, %s974_s3 }
 0x148   : > { %p758_p7 = pnand %p757_p6, %p874_p4 }
 0x149   : > { %p763_p12 = por %p762_p11, %p761_p10 }
 0x14a   : > { %p759_p9 = pneg %p758_p7 }
 0x14b   : > { %p765_p0 = por %p764_p13, %p763_p12 }
 0x14d   : > { %p766_p1 = pnand %p765_p0, %p759_p9 }
 0x14f   : > { %769 = shalt.err (!%p766_p1)
}
 0x150   : > { %686 = dma.vmem_to_hbm [thread:$0]  (%p874_p4), %s976_s29, 32, %s974_s3, %s468_s4  }
 0x151 PF: > { %p692_p2 = scmp.ge.s32.totalorder %s820_s11, 2  ;;  %s494_s24 = sand.u32 1, %s800_s6  }
 0x152   : > { %s495_s25 = scalar_lea.sflag [#allocation3], %s494_s24 }
 0x153   : > { %p689_p3 = pnand %p692_p2, %p881_p8 }
 0x155   : > { %795 = dma.done.wait (!%p689_p3), %s495_s25, 32  }
 0x156   : > { %797 = vsyncadd (!%p689_p3), %s495_s25, 4294967264  ;;  %s14_s11 = sadd.s32 1, %s820_s11   ;;  %s1028_s6 = smov %s804_s7 }
 0x157   : > { %p11_p5 = scmp.ge.s32.totalorder %s14_s11, 4   ;;  %s1029_s7 = smov %s808_s8 }
 0x158   : > { %s1030_s8 = smov %s887_s19  ;;  %s1031_s9 = smov %s816_s10 }
 0x159   : > { %s1032_s10 = smov %s1034_s14  ;;  %13 = sbr.rel (!%p11_p5) target bundleno = 4 (0x4), region = 59 }
 0x160   :  { %500 = vsyncpa [#allocation3], 1 }
 0x161   :  { %502 = vsyncpa [#allocation3 + $0x1], 1 }

</bundles_post_ra>
